<compile_context>
chip_gen: v5e
topology: v5e:2x2
jax: 0.10.0
libtpu: 0.0.40
codegen_flags: <defaults>
</compile_context>

<pallas_src>
import math

import jax
import jax.numpy as jnp
from jax.experimental import pallas as pl
from jax.experimental.pallas import tpu as pltpu

_LANE = 128
_MIN_PALLAS_BYTES = 256 * 1024  # below this a fused XLA add beats any Pallas launch


def _add_pe_kernel(x_ref, enc_ref, o_ref):
    # Pure vadd.  Path 1: x/o/enc all (block_rows, 128).
    # Path 2: x/o (1, rb, 128), enc (rb, 128) -> implicit leading-dim broadcast.
    o_ref[...] = x_ref[...] + enc_ref[...]


def make_sincos_encoding(d_model: int, max_len: int = 64) -> jnp.ndarray:
    """Deterministic sin/cos positional-encoding table, shape (max_len, d_model)."""
    position = jnp.arange(0, max_len, dtype=jnp.float32)[:, None]            # (L, 1)
    div_term = jnp.exp(
        jnp.arange(0, d_model, 2, dtype=jnp.float32)
        * (-(math.log(10000.0) / d_model))
    )                                                                         # (D/2,)
    angles = position * div_term                                              # (L, D/2)
    enc = jnp.zeros((max_len, d_model), dtype=jnp.float32)
    enc = enc.at[:, 0::2].set(jnp.sin(angles))
    enc = enc.at[:, 1::2].set(jnp.cos(angles))
    return enc


def _vmem_config():
    """Return (block_bytes_target, vmem_limit_bytes) for the current TPU generation."""
    try:
        cap = pltpu.get_tpu_info().vmem_capacity_bytes
    except Exception:
        cap = None
    if cap is not None and cap >= 100 * 1024 * 1024:
        # v5e / v6e: 128 MiB physical VMEM -> 8 MiB tiles push per-step overhead below ~3%.
        return 8 * 1024 * 1024, 64 * 1024 * 1024
    # v7x (64 MiB physical per TC) or unknown: 4 MiB tiles, 48 MiB scoped limit.
    return 4 * 1024 * 1024, 48 * 1024 * 1024


def _pick_batch_block(B: int, rows: int, byte_cap_elems: int, sub: int) -> int:
    """Batch elements per block: largest divisor of B that fits the byte cap, keeps the
    block sublane count aligned, and leaves >= min(B, 4) grid steps."""
    min_steps = min(B, 4)
    divs = [d for d in range(B, 0, -1) if B % d == 0]
    for align in (sub, 8):
        for d in divs:
            if d <= byte_cap_elems and (d * rows) % align == 0 and B // d >= min_steps:
                return d
    for d in divs:
        if d <= byte_cap_elems and (d * rows) % 8 == 0:
            return d
    # Last resort: one block equal to the full array (always a legal block shape).
    return B


def positional_encoding_forward(x: jnp.ndarray, encoding: jnp.ndarray,
                                *, use_pallas: bool | None = None) -> jnp.ndarray:
    """x: (B, S, D). encoding: (max_len, D). Returns x + encoding[:S] (in x.dtype)."""
    B, S, D = x.shape
    if S > encoding.shape[0]:
        raise ValueError(
            f"sequence length {S} exceeds positional-encoding max_len {encoding.shape[0]}"
        )
    if encoding.shape[1] != D:
        raise ValueError("d_model mismatch between x and encoding")

    # Hoist slice + dtype cast out of the kernel.
    # NOTE: PyTorch's `x + f32 buffer` would promote a bf16 x to f32; we keep x.dtype
    # for the output (documented precision/dtype divergence, not a bug).
    enc = encoding[:S, :].astype(x.dtype)

    itemsize = jnp.dtype(x.dtype).itemsize
    total_bytes = B * S * D * itemsize
    lane_dense = (S * D) % _LANE == 0

    if use_pallas is None:
        use_pallas = lane_dense and total_bytes >= _MIN_PALLAS_BYTES
    if not use_pallas or not lane_dense:
        # Tiny inputs (launch overhead dwarfs DMA) or a non-lane-dense layout
        # (masked stores): the fused XLA add is at least as fast.
        return x + enc[None, :, :]

    block_target, vmem_limit = _vmem_config()
    rows = (S * D) // _LANE
    per_elem_bytes = rows * _LANE * itemsize
    sub = max(8, 32 // itemsize)  # sublanes per vreg: 8 for f32, 16 for bf16
    cost = pl.CostEstimate(
        flops=B * S * D,
        transcendentals=0,
        bytes_accessed=2 * total_bytes + S * D * itemsize,
    )

    if per_elem_bytes <= block_target:
        # ---- Path 1: whole batch elements per block; batch folded into the sublane axis
        # so vregs pack densely and every store is a full-width unmasked vst.
        bb = _pick_batch_block(B, rows, max(1, block_target // per_elem_bytes), sub)
        blk_bytes = bb * per_elem_bytes
        if 6 * blk_bytes > vmem_limit:
            # Degenerate shape (no aligned divisor of B fits): fall back to the fused XLA add.
            return x + enc[None, :, :]
        x2 = x.reshape(B * rows, _LANE)                 # row-major, metadata-only reshape
        enc2 = enc.reshape(rows, _LANE)
        enc_blk = jnp.tile(enc2, (bb, 1)) if bb > 1 else enc2   # fetched once (constant index)
        out = pl.pallas_call(
            _add_pe_kernel,
            out_shape=jax.ShapeDtypeStruct((B * rows, _LANE), x.dtype),
            grid_spec=pltpu.PrefetchScalarGridSpec(
                num_scalar_prefetch=0,
                grid=(B // bb,),
                in_specs=[
                    pl.BlockSpec((bb * rows, _LANE), lambda i: (i, 0)),  # x tile
                    pl.BlockSpec((bb * rows, _LANE), lambda i: (0, 0)),  # shared enc tile
                ],
                out_specs=pl.BlockSpec((bb * rows, _LANE), lambda i: (i, 0)),
            ),
            compiler_params=pltpu.CompilerParams(
                dimension_semantics=("parallel",),
                vmem_limit_bytes=vmem_limit,
            ),
            cost_estimate=cost,
        )(x2, enc_blk)
        return out.reshape(B, S, D)

    # ---- Path 2: one batch element is larger than the tile target; add a row-tiling grid
    # axis so double-buffered tiles stay at ~block_target bytes for any (B, S, D).
    x3 = x.reshape(B, rows, _LANE)
    enc2 = enc.reshape(rows, _LANE)
    target_rows = max(sub, (block_target // (_LANE * itemsize)) // sub * sub)
    rb = min(rows, target_rows)                      # multiple of the sublane count
    nrb = pl.cdiv(rows, rb)                          # ragged last block handled by Pallas
    out = pl.pallas_call(
        _add_pe_kernel,
        out_shape=jax.ShapeDtypeStruct((B, rows, _LANE), x.dtype),
        grid_spec=pltpu.PrefetchScalarGridSpec(
            num_scalar_prefetch=0,
            grid=(B, nrb),
            in_specs=[
                pl.BlockSpec((1, rb, _LANE), lambda b, j: (b, j, 0)),   # x tile
                pl.BlockSpec((rb, _LANE), lambda b, j: (j, 0)),         # enc row block
            ],
            out_specs=pl.BlockSpec((1, rb, _LANE), lambda b, j: (b, j, 0)),
        ),
        compiler_params=pltpu.CompilerParams(
            dimension_semantics=("parallel", "parallel"),
            vmem_limit_bytes=vmem_limit,
        ),
        cost_estimate=cost,
    )(x3, enc2)
    return out.reshape(B, S, D)


if __name__ == "__main__":
    # Small shapes consistent with the module: batch=2, seq=8, d_model=32, max_len=64.
    B, S, D, MAX_LEN = 2, 8, 32, 64

    key = jax.random.PRNGKey(0)
    x = jax.random.normal(key, (B, S, D), dtype=jnp.float32)

    encoding = make_sincos_encoding(D, MAX_LEN)

    # Force the Pallas path (the size heuristic would route this tiny demo to the
    # fused-XLA fallback) so the kernel itself is exercised.
    out = jax.block_until_ready(positional_encoding_forward(x, encoding, use_pallas=True))

    ref = x + encoding[None, :S, :]
    assert out.shape == (B, S, D)
    assert jnp.allclose(out, ref, atol=1e-6, rtol=1e-6)

    # Dispatcher path (auto heuristic -> fused XLA add at this size) must agree too.
    out_auto = jax.block_until_ready(positional_encoding_forward(x, encoding))
    assert jnp.allclose(out_auto, ref, atol=1e-6, rtol=1e-6)

    print("KERNEL_OK")
</pallas_src>

<mosaic_0001>
module attributes {stable_mosaic.version = 11 : i64} {
  func.func @_add_pe_kernel(%arg0: i32, %arg1: memref<4x128xf32, #tpu.memory_space<vmem>>, %arg2: memref<4x128xf32, #tpu.memory_space<vmem>>, %arg3: memref<4x128xf32, #tpu.memory_space<vmem>>) attributes {dimension_semantics = [#tpu.dimension_semantics<parallel>], iteration_bounds = array<i64: 1>, scalar_prefetch = 0 : i64, scratch_operands = 0 : i64, tpu.core_type = #tpu.core_type<tc>, window_params = [{transform_indices = @transform_0, window_bounds = array<i64: 4, 128>}, {pipeline_mode = #tpu.pipeline_mode<synchronous>, transform_indices = @transform_1, window_bounds = array<i64: 4, 128>}, {transform_indices = @transform_2, window_bounds = array<i64: 4, 128>}]} {
    %c0 = arith.constant 0 : index
    %c0_0 = arith.constant 0 : index
    %0 = vector.load %arg1[%c0, %c0_0] : memref<4x128xf32, #tpu.memory_space<vmem>>, vector<4x128xf32>
    %c0_1 = arith.constant 0 : index
    %c0_2 = arith.constant 0 : index
    %1 = vector.load %arg2[%c0_1, %c0_2] : memref<4x128xf32, #tpu.memory_space<vmem>>, vector<4x128xf32>
    %2 = arith.addf %0, %1 : vector<4x128xf32>
    %c0_3 = arith.constant 0 : index
    %c0_4 = arith.constant 0 : index
    %3 = vector.load %arg3[%c0_3, %c0_4] : memref<4x128xf32, #tpu.memory_space<vmem>>, vector<4x128xf32>
    tpu.vector_store %arg3[%c0_3, %c0_4], %2 {strides = array<i32>} : memref<4x128xf32, #tpu.memory_space<vmem>>, vector<4x128xf32>,
    return
  }
  func.func @transform_0(%arg0: i32) -> (i32, i32) {
    %c0_i32 = arith.constant 0 : i32
    %c0_i32_0 = arith.constant 0 : i32
    return %arg0, %c0_i32 : i32, i32
  }
  func.func @transform_1(%arg0: i32) -> (i32, i32) {
    %c0_i32 = arith.constant 0 : i32
    %c0_i32_0 = arith.constant 0 : i32
    %c0_i32_1 = arith.constant 0 : i32
    return %c0_i32, %c0_i32_0 : i32, i32
  }
  func.func @transform_2(%arg0: i32) -> (i32, i32) {
    %c0_i32 = arith.constant 0 : i32
    %c0_i32_0 = arith.constant 0 : i32
    return %arg0, %c0_i32 : i32, i32
  }
}

</mosaic_0001>

<bundles_post_ra>
// kernel: tpu_custom_call.1
= control target key start
LH: loop header
LB: loop body
LE: loop exit
PB: predicated region body
PF: predicated region fallthrough
CT: control target
= control target key end

     0   :  { %7 = vsyncpa [#allocation3], 0  ;;  %s170_s0 = inlined_call_operand.hbm [shape: f32[4,128], index: 0, kind: input, shape index: {}]   ;;  %s171_s1 = inlined_call_operand.hbm [shape: f32[4,128], index: 1, kind: input, shape index: {}]   ;;  %s172_s2 = inlined_call_operand.hbm [shape: f32[4,128], index: 2, kind: output, shape index: {}]  }
   0x1   :  { %8 = vsyncpa [#allocation6], 0 }
   0x2   :  { %9 = vsyncpa [#allocation4], 0  ;;  %s15_s11 = sshll.u32 %s170_s0, 4  ;;  %s143_s12 = smov [#allocation2]   ;;  %s16_s11 = int_to_ptr.hbm [resolvable:$true] %s15_s11 }
   0x3   :  { %s17_s13 = sshll.u32 %s143_s12, 4  ;;  %s26_s16 = sshll.u32 %s171_s1, 4  ;;  %s18_s13 = int_to_ptr.vmem [resolvable:$true] %s17_s13  ;;  %s27_s16 = int_to_ptr.hbm [resolvable:$true] %s26_s16 }
   0x4   :  { %20 = dma.hbm_to_vmem [thread:$0]  %s16_s11, 64, %s18_s13, [#allocation3]  }
   0x5   :  { %s144_s17 = smov [#allocation5]  }
   0x6   :  { %s28_s18 = sshll.u32 %s144_s17, 4  ;;  %s29_s18 = int_to_ptr.vmem [resolvable:$true] %s28_s18 }
   0x7   :  { %31 = dma.hbm_to_vmem [thread:$0]  %s27_s16, 64, %s29_s18, [#allocation6]  }
   0x8   :  { %137 = dma.done.wait [#allocation3], 64  }
   0x9   :  { %138 = vsyncadd [#allocation3], 4294967232 }
   0xa   :  { %139 = dma.done.wait [#allocation6], 64  }
   0xb   :  { %140 = vsyncadd [#allocation6], 4294967232  ;;  %s145_s19 = smov [#allocation7]   ;;  %s51_s22 = sshll.u32 %s172_s2, 4  ;;  %v40_v0 = vld [vmem:[#allocation2] sm:$0xf]  ;;  %s52_s22 = int_to_ptr.hbm [resolvable:$true] %s51_s22 }
   0xc   :  { %s49_s0 = sshll.u32 %s145_s19, 4  ;;  %v41_v1 = vld [vmem:[#allocation5] sm:$0xf]  ;;  %s50_s0 = int_to_ptr.vmem [resolvable:$true] %s49_s0 }
   0xd   :  { %v42_v2 = vadd.f32 %v41_v1, %v40_v0 }
   0xf   :  { %43 = vst [vmem:[#allocation7] sm:$0xf] %v42_v2 }
  0x10   :  { %54 = dma.vmem_to_hbm [thread:$0]  %s50_s0, 64, %s52_s22, [#allocation4]  }
  0x11   :  { %141 = dma.done.wait [#allocation4], 64  }
  0x12   :  { %142 = vsyncadd [#allocation4], 4294967232 }
  0x13   :  { %59 = vsyncpa [#allocation3], 1 }
  0x14   :  { %60 = vsyncpa [#allocation6], 1 }
  0x15   :  { %61 = vsyncpa [#allocation4], 1 }

</bundles_post_ra>
